<compile_context>
chip_gen: v5e
topology: v5e:2x2
jax: 0.10.0
libtpu: 0.0.40
codegen_flags: <defaults>
</compile_context>

<pallas_src>
import math
import functools

import jax
import jax.numpy as jnp
from jax.experimental import pallas as pl
from jax.experimental.pallas import tpu as pltpu


# ---------------------------------------------------------------------------
# pe buffer construction (mirrors PositionalEncoding.__init__)
# ---------------------------------------------------------------------------
def make_pe_buffer(d_model: int, max_len: int) -> jnp.ndarray:
    position = jnp.arange(max_len, dtype=jnp.float32)[:, None]          # (max_len, 1)
    div_term = jnp.exp(
        jnp.arange(0, d_model, 2, dtype=jnp.float32)
        * (-math.log(10000.0) / d_model)
    )                                                                    # (d_model//2,)
    angles = position * div_term                                         # (max_len, d_model//2)
    pe = jnp.zeros((max_len, d_model), dtype=jnp.float32)
    pe = pe.at[:, 0::2].set(jnp.sin(angles))
    pe = pe.at[:, 1::2].set(jnp.cos(angles))
    return pe


# ---------------------------------------------------------------------------
# Pallas kernels
# ---------------------------------------------------------------------------
def _pe_add_kernel(x_ref, pe_ref, o_ref):
    # x_ref/o_ref: (TB, TR, C); pe_ref: (TR, C), already in x dtype.
    o_ref[...] = x_ref[...] + pe_ref[...][None]


def _pe_add_dropout_kernel(seed_ref, x_ref, pe_ref, o_ref, *, p, rows_total):
    # Training path: x + pe followed by inverted dropout.
    # Randomness: stateless counter-based hash of the global element index
    # (portable VPU int ops only), masked with an integer threshold compare.
    tb, tr, c = x_ref.shape
    s = pl.program_id(0)   # row-tile index
    b = pl.program_id(1)   # batch-tile index (innermost)

    y = x_ref[...] + pe_ref[...][None]          # compute in x dtype

    shape = (tb, tr, c)
    bb = jax.lax.broadcasted_iota(jnp.uint32, shape, 0) + (b * tb).astype(jnp.uint32)
    rr = jax.lax.broadcasted_iota(jnp.uint32, shape, 1) + (s * tr).astype(jnp.uint32)
    cc = jax.lax.broadcasted_iota(jnp.uint32, shape, 2)
    idx = (bb * jnp.uint32(rows_total) + rr) * jnp.uint32(c) + cc

    seed = seed_ref[0].astype(jnp.uint32)
    h = idx * jnp.uint32(0x9E3779B1) + seed     # lowbias32-style mixer
    h = h ^ (h >> 16)
    h = h * jnp.uint32(0x7FEB352D)
    h = h ^ (h >> 15)
    h = h * jnp.uint32(0x846CA68B)
    h = h ^ (h >> 16)

    threshold = min(int(round(p * 4294967296.0)), 4294967295)  # P(drop) ~= p
    keep = h >= jnp.uint32(threshold)
    inv_keep = 1.0 / (1.0 - p)
    o_ref[...] = jnp.where(keep, y * inv_keep, 0.0).astype(o_ref.dtype)


# ---------------------------------------------------------------------------
# Tiling heuristics
# ---------------------------------------------------------------------------
_TARGET_BLOCK_BYTES = 2 * 1024 * 1024   # ~2 MiB per block: safe on v5e/v6e/v7x


def _pick_tiles(B, R, C, itemsize):
    """Pick (TB, TR) block sizes.  Tiny problems collapse to a single block."""
    row_bytes = C * itemsize
    slab = R * row_bytes                         # one batch element
    if slab <= _TARGET_BLOCK_BYTES:
        tr = R
        tb = min(B, max(1, _TARGET_BLOCK_BYTES // max(slab, 1)))
        while tb > 1 and B % tb != 0:            # prefer a divisor of B
            tb -= 1
    else:
        tb = 1
        tr = max(8, (_TARGET_BLOCK_BYTES // row_bytes) // 8 * 8)
        tr = min(tr, R)
        t = tr                                   # prefer a divisor of R
        while t >= 8 and R % t != 0:
            t -= 8
        if t >= 8 and R % t == 0:
            tr = t
    return tb, tr


# ---------------------------------------------------------------------------
# Wrapper (mirrors PositionalEncoding.forward)
# ---------------------------------------------------------------------------
def positional_encoding_forward(
    x: jnp.ndarray,
    pe_buffer: jnp.ndarray,
    *,
    dropout_p: float = 0.1,
    training: bool = False,
    seed: int = 0,
) -> jnp.ndarray:
    B, S, D = x.shape
    max_len = pe_buffer.shape[0]

    # seq_len > max_len branch: recompute an extended pe table (same formula).
    if S > max_len:
        pe_slice = make_pe_buffer(D, S)
    else:
        pe_slice = pe_buffer[:S]
    # Pre-cast pe to x dtype (halves pe HBM bytes for bf16; no in-kernel cast).
    pe_slice = pe_slice.astype(x.dtype)

    # p >= 1 during training: everything is dropped (avoid 1/(1-p) = inf).
    if training and dropout_p >= 1.0:
        return jnp.zeros_like(x)

    # Lane-dense folding when d_model is not a multiple of 128.
    if D % 128 != 0 and (S * D) % 128 == 0:
        R, C = (S * D) // 128, 128
    else:
        R, C = S, D
    x2 = x.reshape(B, R, C)
    pe2 = pe_slice.reshape(R, C)

    TB, TR = _pick_tiles(B, R, C, x.dtype.itemsize)
    # Batch innermost so the pe tile stays resident across the batch loop.
    grid = (pl.cdiv(R, TR), pl.cdiv(B, TB))

    x_spec = pl.BlockSpec((TB, TR, C), lambda s, b: (b, s, 0))
    pe_spec = pl.BlockSpec((TR, C), lambda s, b: (s, 0))
    out_spec = pl.BlockSpec((TB, TR, C), lambda s, b: (b, s, 0))
    out_shape = jax.ShapeDtypeStruct((B, R, C), x.dtype)
    cparams = pltpu.CompilerParams(dimension_semantics=("parallel", "parallel"))

    if training and dropout_p > 0.0:
        seed_arr = jnp.asarray([seed], dtype=jnp.int32)
        kernel = functools.partial(
            _pe_add_dropout_kernel, p=float(dropout_p), rows_total=R
        )
        out = pl.pallas_call(
            kernel,
            out_shape=out_shape,
            grid=grid,
            in_specs=[
                pl.BlockSpec(memory_space=pltpu.MemorySpace.SMEM),  # seed scalar
                x_spec,
                pe_spec,
            ],
            out_specs=out_spec,
            compiler_params=cparams,
        )(seed_arr, x2, pe2)
    else:
        # Eval mode: dropout is identity (matches nn.Dropout in eval()).
        out = pl.pallas_call(
            _pe_add_kernel,
            out_shape=out_shape,
            grid=grid,
            in_specs=[x_spec, pe_spec],
            out_specs=out_spec,
            compiler_params=cparams,
        )(x2, pe2)

    return out.reshape(B, S, D)


# ---------------------------------------------------------------------------
# Demo / self-check
# ---------------------------------------------------------------------------
def _check_eval(B, S, D, max_len, key):
    x = jax.random.normal(key, (B, S, D), dtype=jnp.float32)
    pe = make_pe_buffer(D, max_len)
    out = jax.block_until_ready(positional_encoding_forward(x, pe, training=False))
    if S > max_len:
        ref = x + make_pe_buffer(D, S)[None]
    else:
        ref = x + pe[:S][None]
    assert out.shape == (B, S, D)
    assert jnp.allclose(out, ref, atol=1e-6), f"eval mismatch at {(B, S, D)}"


if __name__ == "__main__":
    B, S, D = 2, 8, 32          # batch, seq_len, d_model
    MAX_LEN = 64                # module's max_len (small for the demo)
    DROPOUT = 0.1

    key = jax.random.PRNGKey(0)
    k0, k1, k2, k3 = jax.random.split(key, 4)

    # --- Eval path: lane-dense folded case (D=32 -> rows of 128 lanes) ---
    x = jax.random.normal(k0, (B, S, D), dtype=jnp.float32)
    pe_buffer = make_pe_buffer(D, MAX_LEN)
    out = jax.block_until_ready(
        positional_encoding_forward(x, pe_buffer, dropout_p=DROPOUT, training=False)
    )
    ref = x + pe_buffer[:S][None]
    assert out.shape == (B, S, D)
    assert jnp.allclose(out, ref, atol=1e-6), "eval path mismatch vs reference"

    # --- Eval path: already lane-dense (D % 128 == 0) ---
    _check_eval(2, 64, 128, 64, k1)
    # --- Eval path: non-foldable fallback (full-dim blocks) ---
    _check_eval(1, 6, 20, 16, k2)
    # --- Eval path: seq_len > max_len (extended pe recomputation) ---
    _check_eval(2, 24, 32, 16, k3)

    # --- Training path: inverted dropout with in-kernel hash PRNG ---
    out_train = jax.block_until_ready(
        positional_encoding_forward(
            x, pe_buffer, dropout_p=DROPOUT, training=True, seed=1234
        )
    )
    assert out_train.shape == (B, S, D)
    assert bool(jnp.all(jnp.isfinite(out_train)))
    kept = out_train != 0.0
    scaled_ref = ref * (1.0 / (1.0 - DROPOUT))
    assert jnp.allclose(
        jnp.where(kept, out_train, 0.0),
        jnp.where(kept, scaled_ref, 0.0),
        atol=1e-5, rtol=1e-5,
    ), "training path: kept values must equal (x + pe) / (1 - p)"

    print("KERNEL_OK")
</pallas_src>

<mosaic_0001>
module attributes {stable_mosaic.version = 11 : i64} {
  func.func @_pe_add_kernel(%arg0: i32, %arg1: i32, %arg2: memref<2x2x128xf32, #tpu.memory_space<vmem>>, %arg3: memref<2x128xf32, #tpu.memory_space<vmem>>, %arg4: memref<2x2x128xf32, #tpu.memory_space<vmem>>) attributes {dimension_semantics = [#tpu.dimension_semantics<parallel>, #tpu.dimension_semantics<parallel>], iteration_bounds = array<i64: 1, 1>, scalar_prefetch = 0 : i64, scratch_operands = 0 : i64, tpu.core_type = #tpu.core_type<tc>, window_params = [{transform_indices = @transform_0, window_bounds = array<i64: 2, 2, 128>}, {transform_indices = @transform_1, window_bounds = array<i64: 2, 128>}, {transform_indices = @transform_2, window_bounds = array<i64: 2, 2, 128>}]} {
    %c0 = arith.constant 0 : index
    %c0_0 = arith.constant 0 : index
    %c0_1 = arith.constant 0 : index
    %0 = vector.load %arg2[%c0, %c0_0, %c0_1] : memref<2x2x128xf32, #tpu.memory_space<vmem>>, vector<2x2x128xf32>
    %c0_2 = arith.constant 0 : index
    %c0_3 = arith.constant 0 : index
    %1 = vector.load %arg3[%c0_2, %c0_3] : memref<2x128xf32, #tpu.memory_space<vmem>>, vector<2x128xf32>
    %2 = vector.shape_cast %1 : vector<2x128xf32> to vector<1x2x128xf32>
    %3 = vector.broadcast %2 : vector<1x2x128xf32> to vector<2x2x128xf32>
    %4 = arith.addf %0, %3 : vector<2x2x128xf32>
    %c0_4 = arith.constant 0 : index
    %c0_5 = arith.constant 0 : index
    %c0_6 = arith.constant 0 : index
    %5 = vector.load %arg4[%c0_4, %c0_5, %c0_6] : memref<2x2x128xf32, #tpu.memory_space<vmem>>, vector<2x2x128xf32>
    tpu.vector_store %arg4[%c0_4, %c0_5, %c0_6], %4 {strides = array<i32>} : memref<2x2x128xf32, #tpu.memory_space<vmem>>, vector<2x2x128xf32>,
    return
  }
  func.func @transform_0(%arg0: i32, %arg1: i32) -> (i32, i32, i32) {
    %c0_i32 = arith.constant 0 : i32
    %c0_i32_0 = arith.constant 0 : i32
    return %arg1, %arg0, %c0_i32 : i32, i32, i32
  }
  func.func @transform_1(%arg0: i32, %arg1: i32) -> (i32, i32) {
    %c0_i32 = arith.constant 0 : i32
    %c0_i32_0 = arith.constant 0 : i32
    return %arg0, %c0_i32 : i32, i32
  }
  func.func @transform_2(%arg0: i32, %arg1: i32) -> (i32, i32, i32) {
    %c0_i32 = arith.constant 0 : i32
    %c0_i32_0 = arith.constant 0 : i32
    return %arg1, %arg0, %c0_i32 : i32, i32, i32
  }
}

</mosaic_0001>

<bundles_post_ra>
// kernel: tpu_custom_call.1
= control target key start
LH: loop header
LB: loop body
LE: loop exit
PB: predicated region body
PF: predicated region fallthrough
CT: control target
= control target key end

     0   :  { %7 = vsyncpa [#allocation3], 0  ;;  %s181_s0 = inlined_call_operand.hbm [shape: f32[2,2,128], index: 0, kind: input, shape index: {}]   ;;  %s182_s1 = inlined_call_operand.hbm [shape: f32[2,128], index: 1, kind: input, shape index: {}]   ;;  %s183_s2 = inlined_call_operand.hbm [shape: f32[2,2,128], index: 2, kind: output, shape index: {}]  }
   0x1   :  { %8 = vsyncpa [#allocation6], 0 }
   0x2   :  { %9 = vsyncpa [#allocation4], 0  ;;  %s14_s11 = sshll.u32 %s181_s0, 4  ;;  %s152_s12 = smov [#allocation2]   ;;  %s15_s11 = int_to_ptr.hbm [resolvable:$true] %s14_s11 }
   0x3   :  { %s16_s13 = sshll.u32 %s152_s12, 4  ;;  %s28_s16 = sshll.u32 %s182_s1, 4  ;;  %s17_s13 = int_to_ptr.vmem [resolvable:$true] %s16_s13  ;;  %s29_s16 = int_to_ptr.hbm [resolvable:$true] %s28_s16 }
   0x4   :  { %s153_s17 = smov 32   ;;  %s154_s18 = smov 2  }
   0x5   :  { %22 = dma.hbm_to_vmem [thread:$0]  %s15_s11, 64, %s17_s13, [#allocation3], %s153_s17, %s153_s17, %s154_s18  }
   0x6   :  { %s155_s19 = smov [#allocation5]  }
   0x7   :  { %s30_s20 = sshll.u32 %s155_s19, 4  ;;  %s31_s20 = int_to_ptr.vmem [resolvable:$true] %s30_s20 }
   0x8   :  { %33 = dma.hbm_to_vmem [thread:$0]  %s29_s16, 32, %s31_s20, [#allocation6]  }
   0x9   :  { %146 = dma.done.wait [#allocation3], 64  }
   0xa   :  { %147 = vsyncadd [#allocation3], 4294967232 }
   0xb   :  { %148 = dma.done.wait [#allocation6], 32  }
   0xc   :  { %149 = vsyncadd [#allocation6], 4294967264  ;;  %s156_s0 = smov [#allocation7]   ;;  %s55_s24 = sshll.u32 %s183_s2, 4  ;;  %v42_v0 = vld [vmem:[#allocation2] sm:$0x3]  ;;  %s56_s24 = int_to_ptr.hbm [resolvable:$true] %s55_s24 }
   0xd   :  { %s53_s21 = sshll.u32 %s156_s0, 4  ;;  %v44_v1 = vld [vmem:[#allocation5] sm:$0x3]  ;;  %v43_v2 = vld [vmem:[#allocation2 + $0x2] sm:$0x3]  ;;  %s54_s21 = int_to_ptr.vmem [resolvable:$true] %s53_s21 }
   0xe   :  { %v45_v3 = vadd.f32 %v44_v1, %v42_v0  ;;  %v46_v4 = vadd.f32 %v44_v1, %v43_v2 }
  0x10   :  { %47 = vst [vmem:[#allocation7] sm:$0x3] %v45_v3 }
  0x11   :  { %48 = vst [vmem:[#allocation7 + $0x2] sm:$0x3] %v46_v4 }
  0x12   :  { %61 = dma.vmem_to_hbm [thread:$0]  %s54_s21, 64, %s56_s24, [#allocation4], %s153_s17, %s153_s17, %s154_s18  }
  0x13   :  { %150 = dma.done.wait [#allocation4], 64  }
  0x14   :  { %151 = vsyncadd [#allocation4], 4294967232 }
  0x15   :  { %66 = vsyncpa [#allocation3], 1 }
  0x16   :  { %67 = vsyncpa [#allocation6], 1 }
  0x17   :  { %68 = vsyncpa [#allocation4], 1 }

</bundles_post_ra>
